<compile_context>
chip_gen: v6e
topology: v6e:2x2x1
jax: 0.10.0
libtpu: 0.0.40
codegen_flags: <defaults>
</compile_context>

<pallas_src>
import functools

import jax
import jax.numpy as jnp
from jax.experimental import pallas as pl
from jax.experimental.pallas import tpu as pltpu


def _acg_kernel(const_ref, x_ref, l_ref, s_ref, o_ref, *, half_p):
    # B = Xp @ L_big   (MXU, 128-wide native shape when p | 128)
    b = jnp.dot(x_ref[...], l_ref[...], preferred_element_type=jnp.float32)
    # Per-sample sum of squares via 0/1 block-selector matmul -> (rows, pack)
    m2 = jnp.dot(b * b, s_ref[...], preferred_element_type=jnp.float32)
    # log_pdf = (logSA + 0.5*log_det) - (p/2) * log(m2)
    o_ref[...] = const_ref[0, 0] - half_p * jnp.log(m2)


def _round_up(a, b):
    return (a + b - 1) // b * b


def acg_log_pdf_pallas(x, l_tri_inv, const_scalar, *, block_rows=1024):
    """x: (N, p) f32, l_tri_inv: (p, p) f32, const_scalar: (1, 1) f32."""
    n, p = x.shape
    half_p = float(p) / 2.0

    # Pack factor: how many samples share one 128-lane row.
    pack = 128 // p if (p <= 128 and 128 % p == 0) else 1
    lane = pack * p

    # Pad N so samples pack evenly into rows of `pack` samples each.
    n_pack = _round_up(n, pack)
    if n_pack != n:
        x = jnp.pad(x, ((0, n_pack - n), (0, 0)))
    rows = n_pack // pack
    xp = x.reshape(rows, lane)  # contiguous reshape: free

    # Sublane tile over packed rows; pad rows to a multiple of the tile.
    block_rows = min(block_rows, _round_up(rows, 8))
    block_rows = max(8, (block_rows // 8) * 8)
    rows_pad = _round_up(rows, block_rows)
    if rows_pad != rows:
        xp = jnp.pad(xp, ((0, rows_pad - rows), (0, 0)))

    # Block-diagonal replication of L and the per-sample sum selector (built once).
    eye = jnp.eye(pack, dtype=jnp.float32)
    l_big = jnp.kron(eye, l_tri_inv.astype(jnp.float32))          # (lane, lane)
    sel = jnp.kron(eye, jnp.ones((p, 1), dtype=jnp.float32))      # (lane, pack)

    kernel = functools.partial(_acg_kernel, half_p=half_p)

    out = pl.pallas_call(
        kernel,
        out_shape=jax.ShapeDtypeStruct((rows_pad, pack), jnp.float32),
        grid_spec=pltpu.PrefetchScalarGridSpec(
            num_scalar_prefetch=0,
            grid=(rows_pad // block_rows,),
            in_specs=[
                pl.BlockSpec(memory_space=pltpu.SMEM),                 # const scalar
                pl.BlockSpec((block_rows, lane), lambda i: (i, 0)),    # Xp tile
                pl.BlockSpec((lane, lane), lambda i: (0, 0)),          # L_big (resident)
                pl.BlockSpec((lane, pack), lambda i: (0, 0)),          # selector (resident)
            ],
            out_specs=pl.BlockSpec((block_rows, pack), lambda i: (i, 0)),
        ),
        compiler_params=pltpu.CompilerParams(
            dimension_semantics=("parallel",)
        ),
    )(const_scalar, xp, l_big, sel)

    # (rows_pad, pack) row-major flatten restores sample order; drop padding.
    return out.reshape(-1)[:n]


def build_acg_params(p, key):
    """Deterministic parameter setup mirroring the module's __init__ / compose."""
    num_params = p * (p - 1) // 2 + p
    l_vec = jax.random.normal(key, (num_params,), dtype=jnp.float32)

    # Row-major lower-triangular scatter (matches torch.tril_indices ordering).
    rows, cols = jnp.tril_indices(p)
    l_tri_inv = jnp.zeros((p, p), dtype=jnp.float32).at[rows, cols].set(l_vec)

    # Diagonal entries of L_vec are at indices i*(i+1)/2 - 1 (1-based i).
    diag_idx = jnp.array([(i * i + i) // 2 - 1 for i in range(1, p + 1)],
                         dtype=jnp.int32)
    log_det_a_inv = 2.0 * jnp.sum(jnp.log(jnp.abs(l_vec[diag_idx])))

    half_p = p / 2.0
    log_sa = (jax.scipy.special.gammaln(jnp.float32(half_p))
              - jnp.log(jnp.float32(2.0))
              - jnp.float32(half_p) * jnp.log(jnp.float32(jnp.pi)))

    const_scalar = (log_sa + 0.5 * log_det_a_inv).reshape(1, 1).astype(jnp.float32)
    return l_tri_inv, const_scalar


def acg_log_pdf_reference(x, l_tri_inv, const_scalar):
    b = jnp.dot(x, l_tri_inv, precision=jax.lax.Precision.HIGHEST)
    m2 = jnp.sum(b * b, axis=1)
    half_p = x.shape[1] / 2.0
    return const_scalar[0, 0] - half_p * jnp.log(m2)


if __name__ == "__main__":
    p = 8          # feature dimension (must be != 1 per the module)
    n = 4096       # number of samples (points on the sphere)

    key = jax.random.PRNGKey(0)
    k_param, k_x = jax.random.split(key)

    l_tri_inv, const_scalar = build_acg_params(p, k_param)

    # Unit-norm samples (ACG is a distribution on the sphere).
    x = jax.random.normal(k_x, (n, p), dtype=jnp.float32)
    x = x / jnp.linalg.norm(x, axis=1, keepdims=True)

    # block_rows=128 packed rows == 2048 samples per tile -> grid of 2 steps
    # (keeps both v7x TensorCores busy even at this small demo size).
    out = acg_log_pdf_pallas(x, l_tri_inv, const_scalar, block_rows=128)
    out = jax.block_until_ready(out)

    ref = acg_log_pdf_reference(x, l_tri_inv, const_scalar)
    assert out.shape == (n,)
    assert jnp.allclose(out, ref, atol=1e-4, rtol=1e-4)

    print("KERNEL_OK")
</pallas_src>

<mosaic_0001>
module attributes {stable_mosaic.version = 11 : i64} {
  func.func @_acg_kernel(%arg0: i32, %arg1: memref<1x1xf32, #tpu.memory_space<smem>>, %arg2: memref<128x128xf32, #tpu.memory_space<vmem>>, %arg3: memref<128x128xf32, #tpu.memory_space<vmem>>, %arg4: memref<128x16xf32, #tpu.memory_space<vmem>>, %arg5: memref<128x16xf32, #tpu.memory_space<vmem>>) attributes {dimension_semantics = [#tpu.dimension_semantics<parallel>], iteration_bounds = array<i64: 2>, scalar_prefetch = 0 : i64, scratch_operands = 0 : i64, tpu.core_type = #tpu.core_type<tc>, window_params = [{transform_indices = @transform_0, window_bounds = array<i64: 1, 1>}, {transform_indices = @transform_1, window_bounds = array<i64: 128, 128>}, {pipeline_mode = #tpu.pipeline_mode<synchronous>, transform_indices = @transform_2, window_bounds = array<i64: 128, 128>}, {pipeline_mode = #tpu.pipeline_mode<synchronous>, transform_indices = @transform_3, window_bounds = array<i64: 128, 16>}, {transform_indices = @transform_4, window_bounds = array<i64: 128, 16>}]} {
    %c0 = arith.constant 0 : index
    %c0_0 = arith.constant 0 : index
    %0 = vector.load %arg2[%c0, %c0_0] : memref<128x128xf32, #tpu.memory_space<vmem>>, vector<128x128xf32>
    %c0_1 = arith.constant 0 : index
    %c0_2 = arith.constant 0 : index
    %1 = vector.load %arg3[%c0_1, %c0_2] : memref<128x128xf32, #tpu.memory_space<vmem>>, vector<128x128xf32>
    %cst = arith.constant dense<0.000000e+00> : vector<128x128xf32>
    %2 = tpu.matmul %0, %1, %cst {dimension_numbers = #tpu.dot_dimension_numbers<[1], [0], [0], [1], [0, 0, 1, 1], [], []>} : vector<128x128xf32>, vector<128x128xf32>, vector<128x128xf32> -> vector<128x128xf32>
    %3 = arith.mulf %2, %2 : vector<128x128xf32>
    %c0_3 = arith.constant 0 : index
    %c0_4 = arith.constant 0 : index
    %4 = vector.load %arg4[%c0_3, %c0_4] : memref<128x16xf32, #tpu.memory_space<vmem>>, vector<128x16xf32>
    %cst_5 = arith.constant dense<0.000000e+00> : vector<128x16xf32>
    %5 = tpu.matmul %3, %4, %cst_5 {dimension_numbers = #tpu.dot_dimension_numbers<[1], [0], [0], [1], [0, 0, 1, 1], [], []>} : vector<128x128xf32>, vector<128x16xf32>, vector<128x16xf32> -> vector<128x16xf32>
    %c0_6 = arith.constant 0 : index
    %c0_7 = arith.constant 0 : index
    %6 = memref.load %arg1[%c0_6, %c0_7] : memref<1x1xf32, #tpu.memory_space<smem>>
    %7 = math.log %5 : vector<128x16xf32>
    %cst_8 = arith.constant 4.000000e+00 : f32
    %8 = vector.broadcast %cst_8 : f32 to vector<128x16xf32>
    %9 = arith.mulf %8, %7 : vector<128x16xf32>
    %10 = vector.broadcast %6 : f32 to vector<128x16xf32>
    %11 = arith.subf %10, %9 : vector<128x16xf32>
    %c0_9 = arith.constant 0 : index
    %c0_10 = arith.constant 0 : index
    %12 = vector.load %arg5[%c0_9, %c0_10] : memref<128x16xf32, #tpu.memory_space<vmem>>, vector<128x16xf32>
    tpu.vector_store %arg5[%c0_9, %c0_10], %11 {strides = array<i32>} : memref<128x16xf32, #tpu.memory_space<vmem>>, vector<128x16xf32>,
    return
  }
  func.func @transform_0(%arg0: i32) -> (i32, i32) {
    %c0_i32 = arith.constant 0 : i32
    %c0_i32_0 = arith.constant 0 : i32
    %c0_i32_1 = arith.constant 0 : i32
    return %c0_i32, %c0_i32_0 : i32, i32
  }
  func.func @transform_1(%arg0: i32) -> (i32, i32) {
    %c0_i32 = arith.constant 0 : i32
    %c0_i32_0 = arith.constant 0 : i32
    return %arg0, %c0_i32 : i32, i32
  }
  func.func @transform_2(%arg0: i32) -> (i32, i32) {
    %c0_i32 = arith.constant 0 : i32
    %c0_i32_0 = arith.constant 0 : i32
    %c0_i32_1 = arith.constant 0 : i32
    return %c0_i32, %c0_i32_0 : i32, i32
  }
  func.func @transform_3(%arg0: i32) -> (i32, i32) {
    %c0_i32 = arith.constant 0 : i32
    %c0_i32_0 = arith.constant 0 : i32
    %c0_i32_1 = arith.constant 0 : i32
    return %c0_i32, %c0_i32_0 : i32, i32
  }
  func.func @transform_4(%arg0: i32) -> (i32, i32) {
    %c0_i32 = arith.constant 0 : i32
    %c0_i32_0 = arith.constant 0 : i32
    return %arg0, %c0_i32 : i32, i32
  }
}

</mosaic_0001>

<bundles_post_ra>
// kernel: tpu_custom_call.1
= control target key start
LH: loop header
LB: loop body
LE: loop exit
PB: predicated region body
PF: predicated region fallthrough
CT: control target
= control target key end

     0   :  { %s1349_s0 = inlined_call_operand.<no memory space> [shape: f32[1,1], index: 0, kind: input, shape index: {}]   ;;  %s1350_s1 = inlined_call_operand.hbm [shape: f32[256,128], index: 1, kind: input, shape index: {}]   ;;  %s1351_s2 = inlined_call_operand.vmem [shape: f32[128,128], index: 2, kind: input, shape index: {}]   ;;  %s1352_s3 = inlined_call_operand.vmem [shape: f32[128,16], index: 3, kind: input, shape index: {}]   ;;  %s1353_s4 = inlined_call_operand.vmem [shape: f32[256,16], index: 4, kind: output, shape index: {}]  }
   0x1   :  { %9 = sst [smem:[#allocation2]] %s1349_s0 }
   0x2   :  { %10 = vsyncpa [#allocation4], 0 }
   0x3   :  { %12 = vsyncpa [#allocation4 + $0x1], 0  ;;  %s1083_s17 = smov 0   ;;  %s1085_s18 = smov 0  }
   0x4   :  { %s1087_s19 = smov 0   ;;  %s1089_s20 = smov 0  }
   0x5 LB: > { %s725_s0 = sadd.s32 4294967295, %s1050_s20   ;;  %s1103_s21 = sadd.s32 1, %s1050_s20   ;;  %s1050_s20 = sphi %s1089_s20, %s1362_s20   ;;  %s1046_s19 = sphi %s1087_s19, %s1361_s19   ;;  %s1042_s18 = sphi %s1085_s18, %s1360_s18   ;;  %s1038_s17 = sphi %s1083_s17, %s1359_s17  }
   0x6   : > { %s43_s22 = ssub.s32 %s1050_s20, %s1103_s21  ;;  %s46_s23 = sadd.s32 1, %s1046_s19 }
   0x7   : > { %p44_p0 = scmp.eq.s32.totalorder %s43_s22, 0  ;;  %p53_p1 = scmp.ne.s32.totalorder %s1046_s19, %s1042_s18 }
   0x8   : > { %p54_p2 = scmp.eq.s32.totalorder %s1050_s20, 0  ;;  %p59_p3 = scmp.ne.s32.totalorder %s1042_s18, %s1038_s17 }
   0x9   : > { %s1113_s24 = scalar_select %p44_p0, %s1046_s19, %s46_s23  }
   0xa   : > { %p55_p4 = por %p54_p2, %p53_p1  ;;  %p60_p5 = scmp.eq.s32.totalorder %s725_s0, 0 }
   0xb   : > { %p921_p6 = scmp.lt.s32.totalorder %s1050_s20, 2  ;;  %s160_s26 = sand.u32 1, %s1046_s19  }
   0xc   : > { %p1118_p7 = por %p60_p5, %p59_p3  ;;  %s729_s27 = sshll.u32 %s160_s26, 7 }
   0xd   : > { %s738_s28 = sshll.u32 %s1050_s20, 11  ;;  %s164_s6 = scalar_lea.vmem [#allocation3], %s729_s27 }
   0xe   : > { %s1355_s25 = scalar_select %p1118_p7, 1, 0 }
   0xf   : > { %s1127_s5 = scalar_lea.hbm %s1350_s1, %s738_s28  ;;  %s171_s7 = sshll.u32 %s164_s6, 4  ;;  %s1129_s7 = int_to_ptr.vmem [resolvable:$true] %s171_s7 }
  0x10   : > { %p1131_p8 = pnand %p921_p6, %p55_p4  ;;  %s1136_s9 = scalar_lea.sflag [#allocation4], %s160_s26 }
  0x11   : > { %s988_s10 = scalar_lea.hbm %s1127_s5, 2048  ;;  %s993_s13 = scalar_lea.hbm %s1350_s1, 4096 }
  0x12   : > { %p989_p10 = scmp.ne.s32.totalorder %s1127_s5, %s988_s10  ;;  %p990_p11 = pneg %p1131_p8 }
  0x13   : > { %p994_p0 = scmp.lt.s32.totalorder %s1127_s5, %s1350_s1  ;;  %p995_p1 = scmp.lt.s32.totalorder %s993_s13, %s988_s10 }
  0x14   : > { %p991_p12 = pnand %p990_p11, %p989_p10 }
  0x15   : > { %p996_p2 = por %p995_p1, %p994_p0 }
  0x16   : > { %p992_p13 = pneg %p991_p12 }
  0x18   : > { %p997_p3 = pnand %p996_p2, %p992_p13 }
  0x1a   : > { %1000 = shalt.err (!%p997_p3)
}
  0x1b   : > { %s1001_s16 = scalar_lea.vmem %s1129_s7, 2048  ;;  %s1052_s17 = smov [#allocation3]  }
  0x1c   : > { %p1002_p4 = scmp.ne.s32.totalorder %s1129_s7, %s1001_s16  ;;  %s1006_s22 = sshll.u32 %s1052_s17, 4  ;;  %s1007_s22 = int_to_ptr.vmem [resolvable:$false] %s1006_s22 }
  0x1d   : > { %s1008_s23 = scalar_lea.vmem %s1007_s22, 4096  ;;  %p1009_p10 = scmp.lt.s32.totalorder %s1129_s7, %s1007_s22 }
  0x1e   : > { %p1004_p5 = pnand %p1002_p4, %p990_p11  ;;  %p1010_p12 = scmp.lt.s32.totalorder %s1008_s23, %s1001_s16 }
  0x20   : > { %p1005_p6 = pneg %p1004_p5  ;;  %p1011_p9 = por %p1010_p12, %p1009_p10 }
  0x22   : > { %p1012_p7 = pnand %p1011_p9, %p1005_p6 }
  0x24   : > { %1015 = shalt.err (!%p1012_p7)
}
  0x25   : > { %s1053_s26 = smov 128   ;;  %s1054_s27 = smov 8  }
  0x26   : > { %920 = dma.hbm_to_vmem [thread:$0]  (!%p1131_p8), %s1127_s5, 2048, %s1129_s7, %s1136_s9, %s1053_s26, %s1053_s26, %s1054_s27  }
  0x27   : > { %p179_p11 = scmp.lt.s32.totalorder %s1050_s20, 3  ;;  %p1357_p13 = scmp.ge.s32.totalorder %s1050_s20, 1 }
  0x29   : > { %p180_p0 = pnand %p1357_p13, %p179_p11 }
  0x2a   : > { %s185_s28 = sand.u32 (!%p180_p0), 1, %s1042_s18   ;;  %p1358_p7 = scmp.ne.s32.totalorder (!%p180_p0), %s1355_s25, 0 }
  0x2b   : > { %183 = sbr.rel (%p180_p0) target bundleno = 524 (0x20c), region = 36  ;;  %s733_s29 = sshll.u32 (!%p180_p0), %s185_s28, 7 }
  0x2c   : > { %s186_s30 = scalar_lea.sflag (!%p180_p0), [#allocation4], %s185_s28  ;;  %s1161_s6 = scalar_lea.vmem (!%p180_p0), [#allocation3], %s733_s29 }
  0x30   : > { %1033 = dma.done.wait (%p1358_p7), %s186_s30, 2048  }
  0x31   : > { %1035 = vsyncadd (%p1358_p7), %s186_s30, 4294965248  ;;  %v252_v0 = vld [vmem:[%s1351_s2 + $0x78] sm:$0xff]  ;;  %v251_v1 = vld [vmem:[%s1351_s2 + $0x70] sm:$0xff]  ;;  %s575_s8 = sld [smem:[#allocation2]]  ;;  %vm641_vm0 = vcmask 130048  }
  0x32   : > { %803 = vmatprep.subr.mxu0 %v252_v0  ;;  %v250_v2 = vld [vmem:[%s1351_s2 + $0x68] sm:$0xff]  ;;  %v249_v3 = vld [vmem:[%s1351_s2 + $0x60] sm:$0xff]  ;;  %v248_v5 = vld [vmem:[%s1351_s2 + $0x58] sm:$0xff] }
  0x33   : > { %804 = vmatpush3.msra.mxu0 %v252_v0  ;;  %v221_v4 = vld [vmem:[%s1161_s6] sm:$0xff]  ;;  %v247_v6 = vld [vmem:[%s1351_s2 + $0x50] sm:$0xff]  ;;  %v246_v7 = vld [vmem:[%s1351_s2 + $0x48] sm:$0xff] }
  0x34   : > { %805 = vmatprep.subr.mxu0 %v251_v1  ;;  %835 = vmatprep.mubr.f32.mxu0 %v221_v4  ;;  %v429_v8 = vld [vmem:[%s1352_s3 + $0x78] sm:$0xff]  ;;  %v428_v9 = vld [vmem:[%s1352_s3 + $0x70] sm:$0xff]  ;;  %v245_v10 = vld [vmem:[%s1351_s2 + $0x40] sm:$0xff] }
  0x35   : > { %806 = vmatpush3.msra.mxu0 %v251_v1  ;;  %859 = vmatprep.subr.mxu1 %v429_v8  ;;  %v427_v11 = vld [vmem:[%s1352_s3 + $0x68] sm:$0xff]  ;;  %v244_v12 = vld [vmem:[%s1351_s2 + $0x38] sm:$0xff]  ;;  %v426_v13 = vld [vmem:[%s1352_s3 + $0x60] sm:$0xff] }
  0x36   : > { %807 = vmatprep.subr.mxu0 %v250_v2  ;;  %860 = vmatpush3.msra.mxu1 %v429_v8  ;;  %v243_v14 = vld [vmem:[%s1351_s2 + $0x30] sm:$0xff]  ;;  %v425_v15 = vld [vmem:[%s1352_s3 + $0x58] sm:$0xff]  ;;  %v242_v16 = vld [vmem:[%s1351_s2 + $0x28] sm:$0xff] }
  0x37   : > { %808 = vmatpush3.msra.mxu0 %v250_v2  ;;  %861 = vmatprep.subr.mxu1 %v428_v9  ;;  %v424_v17 = vld [vmem:[%s1352_s3 + $0x50] sm:$0xff]  ;;  %v241_v18 = vld [vmem:[%s1351_s2 + $0x20] sm:$0xff]  ;;  %v423_v19 = vld [vmem:[%s1352_s3 + $0x48] sm:$0xff] }
  0x38   : > { %809 = vmatprep.subr.mxu0 %v249_v3  ;;  %862 = vmatpush3.msra.mxu1 %v428_v9  ;;  %v240_v20 = vld [vmem:[%s1351_s2 + $0x18] sm:$0xff]  ;;  %v422_v21 = vld [vmem:[%s1352_s3 + $0x40] sm:$0xff]  ;;  %v239_v22 = vld [vmem:[%s1351_s2 + $0x10] sm:$0xff] }
  0x39   : > { %810 = vmatpush3.msra.mxu0 %v249_v3  ;;  %863 = vmatprep.subr.mxu1 %v427_v11  ;;  %v421_v23 = vld [vmem:[%s1352_s3 + $0x38] sm:$0xff]  ;;  %v238_v24 = vld [vmem:[%s1351_s2 + $0x8] sm:$0xff]  ;;  %v420_v25 = vld [vmem:[%s1352_s3 + $0x30] sm:$0xff] }
  0x3a   : > { %811 = vmatprep.subr.mxu0 %v248_v5  ;;  %864 = vmatpush3.msra.mxu1 %v427_v11  ;;  %v237_v26 = vld [vmem:[%s1351_s2] sm:$0xff]  ;;  %v419_v27 = vld [vmem:[%s1352_s3 + $0x28] sm:$0xff]  ;;  %v223_v30 = vld [vmem:[%s1161_s6 + $0x10] sm:$0xff] }
  0x3b   : > { %812 = vmatpush3.msra.mxu0 %v248_v5  ;;  %865 = vmatprep.subr.mxu1 %v426_v13  ;;  %v222_v28 = vld [vmem:[%s1161_s6 + $0x8] sm:$0xff]  ;;  %v418_v29 = vld [vmem:[%s1352_s3 + $0x20] sm:$0xff]  ;;  %v417_v31 = vld [vmem:[%s1352_s3 + $0x18] sm:$0xff] }
  0x3c   : > { %813 = vmatprep.subr.mxu0 %v247_v6  ;;  %866 = vmatpush3.msra.mxu1 %v426_v13  ;;  %v224_v32 = vld [vmem:[%s1161_s6 + $0x18] sm:$0xff]  ;;  %v225_v33 = vld [vmem:[%s1161_s6 + $0x20] sm:$0xff]  ;;  %v226_v34 = vld [vmem:[%s1161_s6 + $0x28] sm:$0xff] }
  0x3d   : > { %814 = vmatpush3.msra.mxu0 %v247_v6  ;;  %867 = vmatprep.subr.mxu1 %v425_v15  ;;  %v227_v35 = vld [vmem:[%s1161_s6 + $0x30] sm:$0xff]  ;;  %v228_v36 = vld [vmem:[%s1161_s6 + $0x38] sm:$0xff]  ;;  %v229_v37 = vld [vmem:[%s1161_s6 + $0x40] sm:$0xff] }
  0x3e   : > { %815 = vmatprep.subr.mxu0 %v246_v7  ;;  %868 = vmatpush3.msra.mxu1 %v425_v15  ;;  %v230_v38 = vld [vmem:[%s1161_s6 + $0x48] sm:$0xff]  ;;  %v231_v39 = vld [vmem:[%s1161_s6 + $0x50] sm:$0xff]  ;;  %v232_v40 = vld [vmem:[%s1161_s6 + $0x58] sm:$0xff] }
  0x3f   : > { %816 = vmatpush3.msra.mxu0 %v246_v7  ;;  %869 = vmatprep.subr.mxu1 %v424_v17  ;;  %v233_v41 = vld [vmem:[%s1161_s6 + $0x60] sm:$0xff]  ;;  %v234_v42 = vld [vmem:[%s1161_s6 + $0x68] sm:$0xff]  ;;  %v235_v43 = vld [vmem:[%s1161_s6 + $0x70] sm:$0xff] }
  0x40   : > { %817 = vmatprep.subr.mxu0 %v245_v10  ;;  %870 = vmatpush3.msra.mxu1 %v424_v17  ;;  %v236_v44 = vld [vmem:[%s1161_s6 + $0x78] sm:$0xff]  ;;  %v416_v45 = vld [vmem:[%s1352_s3 + $0x10] sm:$0xff]  ;;  %v415_v46 = vld [vmem:[%s1352_s3 + $0x8] sm:$0xff]  ;;  %s734_s6 = sshll.u32 %s725_s0, 4 }
  0x41   : > { %818 = vmatpush3.msra.mxu0 %v245_v10  ;;  %871 = vmatprep.subr.mxu1 %v423_v19  ;;  %v414_v47 = vld [vmem:[%s1352_s3] sm:$0xff]  ;;  %p216_p8 = scmp.lt.s32.totalorder %s734_s6, 31 }
  0x42   : > { %819 = vmatprep.subr.mxu0 %v244_v12  ;;  %872 = vmatpush3.msra.mxu1 %v423_v19 }
  0x43   : > { %820 = vmatpush3.msra.mxu0 %v244_v12  ;;  %873 = vmatprep.subr.mxu1 %v422_v21  ;;  %s1364_s6 = smov (!%p216_p8, %s734_s6), 31 }
  0x44   : > { %821 = vmatprep.subr.mxu0 %v243_v14  ;;  %874 = vmatpush3.msra.mxu1 %v422_v21  ;;  %s735_s9 = sshll.u32 %s1364_s6, 3 }
  0x45   : > { %822 = vmatpush3.msra.mxu0 %v243_v14  ;;  %875 = vmatprep.subr.mxu1 %v421_v23  ;;  %s1286_s12 = scalar_lea.vmem %s1353_s4, %s735_s9 }
  0x46   : > { %823 = vmatprep.subr.mxu0 %v242_v16  ;;  %876 = vmatpush3.msra.mxu1 %v421_v23 }
  0x47   : > { %824 = vmatpush3.msra.mxu0 %v242_v16  ;;  %877 = vmatprep.subr.mxu1 %v420_v25 }
  0x48   : > { %825 = vmatprep.subr.mxu0 %v241_v18  ;;  %878 = vmatpush3.msra.mxu1 %v420_v25 }
  0x49   : > { %826 = vmatpush3.msra.mxu0 %v241_v18  ;;  %879 = vmatprep.subr.mxu1 %v419_v27 }
  0x4a   : > { %827 = vmatprep.subr.mxu0 %v240_v20  ;;  %880 = vmatpush3.msra.mxu1 %v419_v27  ;;  %v1281_v27 = vstv %s575_s8 }
  0x4b   : > { %828 = vmatpush3.msra.mxu0 %v240_v20  ;;  %881 = vmatprep.subr.mxu1 %v418_v29 }
  0x4c   : > { %829 = vmatprep.subr.mxu0 %v239_v22  ;;  %882 = vmatpush3.msra.mxu1 %v418_v29 }
  0x4d   : > { %830 = vmatpush3.msra.mxu0 %v239_v22  ;;  %883 = vmatprep.subr.mxu1 %v417_v31 }
  0x4e   : > { %831 = vmatprep.subr.mxu0 %v238_v24  ;;  %884 = vmatpush3.msra.mxu1 %v417_v31 }
  0x4f   : > { %832 = vmatpush3.msra.mxu0 %v238_v24  ;;  %885 = vmatprep.subr.mxu1 %v416_v45 }
  0x50   : > { %833 = vmatprep.subr.mxu0 %v237_v26  ;;  %886 = vmatpush3.msra.mxu1 %v416_v45 }
  0x51   : > { %834 = vmatpush3.msra.mxu0 %v237_v26  ;;  %887 = vmatprep.subr.mxu1 %v415_v46 }
  0x52   : > { %836 = vmatmul.mubr.f32.vlgmr.msra.gmra.mxu0 %v222_v28  ;;  %888 = vmatpush3.msra.mxu1 %v415_v46 }
  0x53   : > { %838 = vmatprep.mubr.f32.mxu0 %v223_v30  ;;  %889 = vmatprep.subr.mxu1 %v414_v47 }
  0x54   : > { %890 = vmatpush3.msra.mxu1 %v414_v47 }
  0x56   : > { %839 = vmatmul.mubr.f32.gmra.mxu0 %v224_v32 }
  0x57   : > { %841 = vmatprep.mubr.f32.mxu0 %v225_v33 }
  0x5a   : > { %842 = vmatmul.mubr.f32.gmra.mxu0 %v226_v34 }
  0x5b   : > { %844 = vmatprep.mubr.f32.mxu0 %v227_v35 }
  0x5e   : > { %845 = vmatmul.mubr.f32.gmra.mxu0 %v228_v36 }
  0x5f   : > { %847 = vmatprep.mubr.f32.mxu0 %v229_v37 }
  0x62   : > { %848 = vmatmul.mubr.f32.gmra.mxu0 %v230_v38 }
  0x63   : > { %850 = vmatprep.mubr.f32.mxu0 %v231_v39 }
  0x66   : > { %851 = vmatmul.mubr.f32.gmra.mxu0 %v232_v40 }
  0x67   : > { %853 = vmatprep.mubr.f32.mxu0 %v233_v41 }
  0x6a   : > { %854 = vmatmul.mubr.f32.gmra.mxu0 %v234_v42 }
  0x6b   : > { %856 = vmatprep.mubr.f32.mxu0 %v235_v43 }
  0x6e   : > { %857 = vmatmul.mubr.f32.gmra.mxu0 %v236_v44 }
 0x112   : > { %v837_v48 = vpop.f32.mrf.mxu0 }
 0x113   : > { %v399_v51 = vmul.f32 %v837_v48, %v837_v48 }
 0x114   : > { %v319_v49 = vpop.f32.mrf.mxu0 }
 0x115   : > { %v398_v50 = vmul.f32 %v319_v49, %v319_v49 }
 0x116   : > { %v840_v52 = vpop.f32.mrf.mxu0 }
 0x117   : > { %891 = vmatprep.mubr.f32.mxu1 %v398_v50  ;;  %v401_v55 = vmul.f32 %v840_v52, %v840_v52 }
 0x118   : > { %v329_v53 = vpop.f32.mrf.mxu0  ;;  %892 = vmatmul.mubr.f32.vlgmr.msra.gmra.mxu1 %v399_v51 }
 0x119   : > { %v400_v54 = vmul.f32 %v329_v53, %v329_v53 }
 0x11a   : > { %v843_v56 = vpop.f32.mrf.mxu0 }
 0x11b   : > { %894 = vmatprep.mubr.f32.mxu1 %v400_v54  ;;  %v403_v59 = vmul.f32 %v843_v56, %v843_v56 }
 0x11c   : > { %v339_v57 = vpop.f32.mrf.mxu0  ;;  %895 = vmatmul.mubr.f32.gmra.mxu1 %v401_v55 }
 0x11d   : > { %v402_v58 = vmul.f32 %v339_v57, %v339_v57 }
 0x11e   : > { %v846_v60 = vpop.f32.mrf.mxu0 }
 0x11f   : > { %897 = vmatprep.mubr.f32.mxu1 %v402_v58  ;;  %v405_v63 = vmul.f32 %v846_v60, %v846_v60 }
 0x120   : > { %v349_v61 = vpop.f32.mrf.mxu0  ;;  %898 = vmatmul.mubr.f32.gmra.mxu1 %v403_v59 }
 0x121   : > { %v404_v62 = vmul.f32 %v349_v61, %v349_v61 }
 0x122   : > { %v849_v0 = vpop.f32.mrf.mxu0 }
 0x123   : > { %900 = vmatprep.mubr.f32.mxu1 %v404_v62  ;;  %v407_v3 = vmul.f32 %v849_v0, %v849_v0 }
 0x124   : > { %v359_v1 = vpop.f32.mrf.mxu0  ;;  %901 = vmatmul.mubr.f32.gmra.mxu1 %v405_v63 }
 0x125   : > { %v406_v2 = vmul.f32 %v359_v1, %v359_v1 }
 0x126   : > { %v852_v4 = vpop.f32.mrf.mxu0 }
 0x127   : > { %903 = vmatprep.mubr.f32.mxu1 %v406_v2  ;;  %v409_v7 = vmul.f32 %v852_v4, %v852_v4 }
 0x128   : > { %v369_v5 = vpop.f32.mrf.mxu0  ;;  %904 = vmatmul.mubr.f32.gmra.mxu1 %v407_v3 }
 0x129   : > { %v408_v6 = vmul.f32 %v369_v5, %v369_v5 }
 0x12a   : > { %v855_v8 = vpop.f32.mrf.mxu0 }
 0x12b   : > { %906 = vmatprep.mubr.f32.mxu1 %v408_v6  ;;  %v411_v11 = vmul.f32 %v855_v8, %v855_v8 }
 0x12c   : > { %v379_v9 = vpop.f32.mrf.mxu0  ;;  %907 = vmatmul.mubr.f32.gmra.mxu1 %v409_v7 }
 0x12d   : > { %v410_v10 = vmul.f32 %v379_v9, %v379_v9 }
 0x12e   : > { %v858_v12 = vpop.f32.mrf.mxu0 }
 0x12f   : > { %909 = vmatprep.mubr.f32.mxu1 %v410_v10  ;;  %v413_v15 = vmul.f32 %v858_v12, %v858_v12 }
 0x130   : > { %v389_v13 = vpop.f32.mrf.mxu0  ;;  %910 = vmatmul.mubr.f32.gmra.mxu1 %v411_v11 }
 0x131   : > { %v412_v14 = vmul.f32 %v389_v13, %v389_v13 }
 0x133   : > { %912 = vmatprep.mubr.f32.mxu1 %v412_v14 }
 0x134   : > { %913 = vmatmul.mubr.f32.gmra.mxu1 %v413_v15 }
 0x1d8   : > { %v893_v16 = vpop.f32.mrf.mxu1 }
 0x1d9   : > { %956 = vlog2.f32 %v893_v16 }
 0x1da   : > { %v496_v17 = vpop.f32.mrf.mxu1 }
 0x1db   : > { %958 = vlog2.f32 %v496_v17 }
 0x1dc   : > { %v896_v18 = vpop.f32.mrf.mxu1 }
 0x1dd   : > { %960 = vlog2.f32 %v896_v18 }
 0x1de   : > { %v506_v19 = vpop.f32.mrf.mxu1 }
 0x1df   : > { %962 = vlog2.f32 %v506_v19 }
 0x1e0   : > { %v899_v20 = vpop.f32.mrf.mxu1 }
 0x1e1   : > { %964 = vlog2.f32 %v899_v20 }
 0x1e2   : > { %v516_v21 = vpop.f32.mrf.mxu1 }
 0x1e3   : > { %966 = vlog2.f32 %v516_v21 }
 0x1e4   : > { %v902_v22 = vpop.f32.mrf.mxu1 }
 0x1e5   : > { %968 = vlog2.f32 %v902_v22 }
 0x1e6   : > { %v957_v23 = vpop.eup %956  ;;  %v526_v24 = vpop.f32.mrf.mxu1 }
 0x1e7   : > { %v579_v25 = vmul.f32 0.6931472, %v957_v23  ;;  %970 = vlog2.f32 %v526_v24 }
 0x1e8   : > { %v959_v26 = vpop.eup %958  ;;  %v905_v28 = vpop.f32.mrf.mxu1 }
 0x1e9   : > { %v609_v29 = vmul.f32 4.0, %v579_v25  ;;  %v577_v30 = vmul.f32 0.6931472, %v959_v26  ;;  %972 = vlog2.f32 %v905_v28 }
 0x1ea   : > { %v961_v31 = vpop.eup %960  ;;  %v536_v32 = vpop.f32.mrf.mxu1 }
 0x1eb   : > { %v626_v33 = vsub.f32 %v1281_v27, %v609_v29  ;;  %v608_v34 = vmul.f32 4.0, %v577_v30  ;;  %v583_v35 = vmul.f32 0.6931472, %v961_v31  ;;  %974 = vlog2.f32 %v536_v32 }
 0x1ec   : > { %v963_v36 = vpop.eup %962  ;;  %v908_v37 = vpop.f32.mrf.mxu1 }
 0x1ed   : > { %643 = vst.msk [vmem:[%s1286_s12 + $0x8] sm:$0xff] %vm641_vm0, %v626_v33  ;;  %v625_v38 = vsub.f32 %v1281_v27, %v608_v34  ;;  %v611_v39 = vmul.f32 4.0, %v583_v35  ;;  %v581_v40 = vmul.f32 0.6931472, %v963_v36  ;;  %976 = vlog2.f32 %v908_v37 }
 0x1ee   : > { %v965_v41 = vpop.eup %964  ;;  %v546_v42 = vpop.f32.mrf.mxu1 }
 0x1ef   : > { %642 = vst.msk [vmem:[%s1286_s12] sm:$0xff] %vm641_vm0, %v625_v38  ;;  %v628_v43 = vsub.f32 %v1281_v27, %v611_v39  ;;  %v610_v44 = vmul.f32 4.0, %v581_v40  ;;  %v587_v45 = vmul.f32 0.6931472, %v965_v41  ;;  %978 = vlog2.f32 %v546_v42 }
 0x1f0   : > { %v967_v46 = vpop.eup %966  ;;  %v911_v47 = vpop.f32.mrf.mxu1 }
 0x1f1   : > { %645 = vst.msk [vmem:[%s1286_s12 + $0x18] sm:$0xff] %vm641_vm0, %v628_v43  ;;  %v627_v48 = vsub.f32 %v1281_v27, %v610_v44  ;;  %v613_v49 = vmul.f32 4.0, %v587_v45  ;;  %v585_v50 = vmul.f32 0.6931472, %v967_v46  ;;  %980 = vlog2.f32 %v911_v47 }
 0x1f2   : > { %v969_v51 = vpop.eup %968  ;;  %v556_v52 = vpop.f32.mrf.mxu1 }
 0x1f3   : > { %644 = vst.msk [vmem:[%s1286_s12 + $0x10] sm:$0xff] %vm641_vm0, %v627_v48  ;;  %v630_v53 = vsub.f32 %v1281_v27, %v613_v49  ;;  %v612_v54 = vmul.f32 4.0, %v585_v50  ;;  %v591_v55 = vmul.f32 0.6931472, %v969_v51  ;;  %982 = vlog2.f32 %v556_v52 }
 0x1f4   : > { %v971_v56 = vpop.eup %970  ;;  %v914_v57 = vpop.f32.mrf.mxu1 }
 0x1f5   : > { %647 = vst.msk [vmem:[%s1286_s12 + $0x28] sm:$0xff] %vm641_vm0, %v630_v53  ;;  %v629_v58 = vsub.f32 %v1281_v27, %v612_v54  ;;  %v615_v59 = vmul.f32 4.0, %v591_v55  ;;  %v589_v60 = vmul.f32 0.6931472, %v971_v56  ;;  %984 = vlog2.f32 %v914_v57 }
 0x1f6   : > { %v973_v61 = vpop.eup %972  ;;  %v566_v62 = vpop.f32.mrf.mxu1 }
 0x1f7   : > { %646 = vst.msk [vmem:[%s1286_s12 + $0x20] sm:$0xff] %vm641_vm0, %v629_v58  ;;  %v632_v63 = vsub.f32 %v1281_v27, %v615_v59  ;;  %v614_v0 = vmul.f32 4.0, %v589_v60  ;;  %v595_v1 = vmul.f32 0.6931472, %v973_v61  ;;  %986 = vlog2.f32 %v566_v62 }
 0x1f8   : > { %v975_v2 = vpop.eup %974 }
 0x1f9   : > { %649 = vst.msk [vmem:[%s1286_s12 + $0x38] sm:$0xff] %vm641_vm0, %v632_v63  ;;  %v631_v3 = vsub.f32 %v1281_v27, %v614_v0  ;;  %v617_v4 = vmul.f32 4.0, %v595_v1  ;;  %v593_v5 = vmul.f32 0.6931472, %v975_v2 }
 0x1fa   : > { %v977_v6 = vpop.eup %976 }
 0x1fb   : > { %648 = vst.msk [vmem:[%s1286_s12 + $0x30] sm:$0xff] %vm641_vm0, %v631_v3  ;;  %v634_v7 = vsub.f32 %v1281_v27, %v617_v4  ;;  %v616_v8 = vmul.f32 4.0, %v593_v5  ;;  %v599_v9 = vmul.f32 0.6931472, %v977_v6 }
 0x1fc   : > { %v979_v10 = vpop.eup %978 }
 0x1fd   : > { %651 = vst.msk [vmem:[%s1286_s12 + $0x48] sm:$0xff] %vm641_vm0, %v634_v7  ;;  %v633_v11 = vsub.f32 %v1281_v27, %v616_v8  ;;  %v619_v12 = vmul.f32 4.0, %v599_v9  ;;  %v597_v13 = vmul.f32 0.6931472, %v979_v10 }
 0x1fe   : > { %v981_v14 = vpop.eup %980 }
 0x1ff   : > { %650 = vst.msk [vmem:[%s1286_s12 + $0x40] sm:$0xff] %vm641_vm0, %v633_v11  ;;  %v636_v15 = vsub.f32 %v1281_v27, %v619_v12  ;;  %v618_v16 = vmul.f32 4.0, %v597_v13  ;;  %v603_v17 = vmul.f32 0.6931472, %v981_v14 }
 0x200   : > { %v983_v18 = vpop.eup %982 }
 0x201   : > { %653 = vst.msk [vmem:[%s1286_s12 + $0x58] sm:$0xff] %vm641_vm0, %v636_v15  ;;  %v635_v19 = vsub.f32 %v1281_v27, %v618_v16  ;;  %v621_v20 = vmul.f32 4.0, %v603_v17  ;;  %v601_v21 = vmul.f32 0.6931472, %v983_v18 }
 0x202   : > { %v985_v22 = vpop.eup %984 }
 0x203   : > { %652 = vst.msk [vmem:[%s1286_s12 + $0x50] sm:$0xff] %vm641_vm0, %v635_v19  ;;  %v638_v23 = vsub.f32 %v1281_v27, %v621_v20  ;;  %v620_v24 = vmul.f32 4.0, %v601_v21  ;;  %v607_v25 = vmul.f32 0.6931472, %v985_v22 }
 0x204   : > { %v987_v26 = vpop.eup %986 }
 0x205   : > { %655 = vst.msk [vmem:[%s1286_s12 + $0x68] sm:$0xff] %vm641_vm0, %v638_v23  ;;  %v637_v28 = vsub.f32 %v1281_v27, %v620_v24  ;;  %v623_v29 = vmul.f32 4.0, %v607_v25  ;;  %v605_v30 = vmul.f32 0.6931472, %v987_v26 }
 0x207   : > { %654 = vst.msk [vmem:[%s1286_s12 + $0x60] sm:$0xff] %vm641_vm0, %v637_v28  ;;  %v640_v31 = vsub.f32 %v1281_v27, %v623_v29  ;;  %v622_v32 = vmul.f32 4.0, %v605_v30 }
 0x209   : > { %657 = vst.msk [vmem:[%s1286_s12 + $0x78] sm:$0xff] %vm641_vm0, %v640_v31  ;;  %v639_v33 = vsub.f32 %v1281_v27, %v622_v32 }
 0x20b   : > { %656 = vst.msk [vmem:[%s1286_s12 + $0x70] sm:$0xff] %vm641_vm0, %v639_v33 }
 0x20c PF: > { %p15_p9 = scmp.ge.s32.totalorder %s1103_s21, 4   ;;  %s1359_s17 = smov %s1042_s18 }
 0x20d   : > { %s1360_s18 = smov %s1046_s19  ;;  %s1361_s19 = smov %s1113_s24 }
 0x20e   : > { %s1362_s20 = smov %s1103_s21  ;;  %17 = sbr.rel (!%p15_p9) target bundleno = 5 (0x5), region = 76 }
 0x213   :  { %680 = vsyncpa [#allocation4], 1 }
 0x214   :  { %682 = vsyncpa [#allocation4 + $0x1], 1 }

</bundles_post_ra>
